<compile_context>
chip_gen: v5e
topology: v5e:2x2
jax: 0.10.0
libtpu: 0.0.40
codegen_flags: <defaults>
</compile_context>

<pallas_src>
import functools
import numpy as np
import jax
import jax.numpy as jnp
from jax import lax
from jax.experimental import pallas as pl
from jax.experimental.pallas import tpu as pltpu


# ------------------------------------------------------------------ layout helpers
def _row_width(W):
    """Padded row width: W + 2 conv-pad columns rounded up to 16 so every row offset used by the
    kernels stays aligned for packed bf16 sublane tiles."""
    return ((W + 2) + 15) // 16 * 16


def to_canonical(x):
    """NHWC image -> canonical zero-padded, row-flattened activation (N, (H+2)*Wp, C).
    Real pixel (h, w) lives at flat row (h+1)*Wp + (w+1)."""
    N, H, W, C = x.shape
    Wp = _row_width(W)
    xp = jnp.pad(x, ((0, 0), (1, 1), (1, Wp - W - 1), (0, 0)))
    return xp.reshape(N, (H + 2) * Wp, C)


def from_canonical(xc, H, W):
    N, R, C = xc.shape
    Wp = _row_width(W)
    return xc.reshape(N, H + 2, Wp, C)[:, 1:1 + H, 1:1 + W, :]


# ----------------------------------------------------------------------------- conv
def _conv_bn_relu_kernel(x_ref, w_ref, b_ref, o_ref, *, Wp, Lacc, W, Cin, pack_k):
    """Fused 3x3 conv (pad=1) + folded BatchNorm + ReLU for one image x one Cout tile.

    x_ref : (1, R, Cin)     bf16 canonical layout, R = (H+2)*Wp
    w_ref : (3, 3*Cin, TC)  bf16; dim0 = dx, dim1 = dy-major (dy*Cin + ci); BN scale folded in
    b_ref : (1, TC)         f32 folded BN bias
    o_ref : (1, R, TC)      bf16 canonical layout (directly consumable by the next conv)
    """
    tc = o_ref.shape[2]
    H = Lacc // Wp
    # Three aligned row windows, one per dy (no unaligned bf16 loads anywhere).
    rows = [x_ref[0, dy * Wp:dy * Wp + Lacc, :] for dy in range(3)]

    if pack_k:
        # Pack the 3 dy taps into K: one K=3*Cin matmul per dx (fills the MXU depth).
        # The lane-axis concat is at 128-channel boundaries -> vreg-granular, cheap.
        lhs = jnp.concatenate(rows, axis=1)                       # (Lacc, 3*Cin)

        def partial(dx):
            return jnp.dot(lhs, w_ref[dx], preferred_element_type=jnp.float32)
    else:
        # Small-Cin layers (Cin = 3 or 64): keep per-dy matmuls (a lane concat at non-128
        # boundaries would need cross-lane shuffles).
        def partial(dx):
            acc = jnp.dot(rows[0], w_ref[dx, 0 * Cin:1 * Cin, :], preferred_element_type=jnp.float32)
            acc = acc + jnp.dot(rows[1], w_ref[dx, 1 * Cin:2 * Cin, :], preferred_element_type=jnp.float32)
            acc = acc + jnp.dot(rows[2], w_ref[dx, 2 * Cin:3 * Cin, :], preferred_element_type=jnp.float32)
            return acc

    # out[r] = P0[r-1] + P1[r] + P2[r+1]: shift each dx partial immediately, keep a single live
    # f32 accumulator.  Slice+concat with zero fill is deterministic (no roll-convention probe);
    # the zeroed boundary rows only ever land on masked padding positions.
    zrow = jnp.zeros((1, tc), jnp.float32)
    p0 = partial(0)
    conv = jnp.concatenate([zrow, p0[:-1]], axis=0)               # s[r] = P0[r-1]
    conv = conv + partial(1)
    p2 = partial(2)
    conv = conv + jnp.concatenate([p2[1:], zrow], axis=0)         # s[r] = P2[r+1]

    # In-kernel column mask: real output columns are 1..W inside each Wp-wide flat row.
    col = lax.broadcasted_iota(jnp.int32, (H, Wp, 1), 1).reshape(Lacc, 1)
    keep = (col >= 1) & (col <= W)
    y = jnp.where(keep, jnp.maximum(conv + b_ref[...], 0.0), 0.0).astype(o_ref.dtype)

    zpad = jnp.zeros((Wp, tc), o_ref.dtype)
    o_ref[0, 0:Wp, :] = zpad                                      # top conv-pad row
    o_ref[0, Wp:Wp + Lacc, :] = y                                 # interior (lane-dense)
    o_ref[0, Wp + Lacc:Lacc + 2 * Wp, :] = zpad                   # bottom conv-pad row


def conv3x3_bn_relu(xc, w_packed, bias, H, W):
    """xc: (N, R, Cin) bf16 canonical; w_packed: (3, 3*Cin, Cout) bf16 (BN folded);
    bias: (1, Cout) f32 (BN folded)."""
    N, R, Cin = xc.shape
    assert w_packed.shape[1] == 3 * Cin, (w_packed.shape, Cin)
    Cout = w_packed.shape[2]
    Wp = _row_width(W)
    Lacc = H * Wp
    assert R == (H + 2) * Wp, (R, H, W, Wp)
    TC = min(Cout, 256)
    assert Cout % TC == 0
    pack_k = (Cin % 128 == 0)
    kernel = functools.partial(_conv_bn_relu_kernel,
                               Wp=Wp, Lacc=Lacc, W=W, Cin=Cin, pack_k=pack_k)
    # TODO(synk): add an image-row (H) tile axis + Buffered(1) weight buffering once large
    #             images / v7x's 64 MiB VMEM become the target; full-row blocks are fine here.
    return pl.pallas_call(
        kernel,
        out_shape=jax.ShapeDtypeStruct((N, R, Cout), jnp.bfloat16),
        grid=(Cout // TC, N),                    # Cout tile outer -> weight tile reused over batch
        in_specs=[
            pl.BlockSpec((1, R, Cin), lambda co, n: (n, 0, 0)),
            pl.BlockSpec((3, 3 * Cin, TC), lambda co, n: (0, 0, co)),
            pl.BlockSpec((1, TC), lambda co, n: (0, co)),
        ],
        out_specs=pl.BlockSpec((1, R, TC), lambda co, n: (n, 0, co)),
        compiler_params=pltpu.CompilerParams(
            dimension_semantics=("parallel", "parallel")),
    )(xc, w_packed, bias)


# ----------------------------------------------------------------------------- pool
def _maxpool_kernel(xw_ref, p_ref, i_ref):
    # xw_ref: (1, 4, S, C) bf16 -> pooled (1, S, C) bf16, first-max window index int8.
    x0 = xw_ref[0, 0]
    x1 = xw_ref[0, 1]
    x2 = xw_ref[0, 2]
    x3 = xw_ref[0, 3]
    mx = jnp.maximum(jnp.maximum(x0, x1), jnp.maximum(x2, x3))
    p_ref[0] = mx
    idx = jnp.full(mx.shape, 3, jnp.int32)
    idx = jnp.where(x2 == mx, 2, idx)
    idx = jnp.where(x1 == mx, 1, idx)
    idx = jnp.where(x0 == mx, 0, idx)            # first-max wins (argmax-style tie-break)
    i_ref[0] = idx.astype(jnp.int8)


def maxpool2x2(xc, H, W):
    """Canonical (H,W) activation -> (canonical (H/2,W/2) pooled, int8 window indices).
    TODO(synk): the window extraction / canonical re-padding still goes through XLA
                reshape/transpose glue; fusing it in-kernel needs strided sublane access."""
    N, _, C = xc.shape
    x = from_canonical(xc, H, W)
    h2, w2 = H // 2, W // 2
    S = h2 * w2
    xw = (x.reshape(N, h2, 2, w2, 2, C)
           .transpose(0, 2, 4, 1, 3, 5)          # window axis leading -> (N, 4, S, C)
           .reshape(N, 4, S, C))
    pooled, idx = pl.pallas_call(
        _maxpool_kernel,
        out_shape=(jax.ShapeDtypeStruct((N, S, C), xw.dtype),
                   jax.ShapeDtypeStruct((N, S, C), jnp.int8)),
        grid=(N,),
        in_specs=[pl.BlockSpec((1, 4, S, C), lambda n: (n, 0, 0, 0))],
        out_specs=(pl.BlockSpec((1, S, C), lambda n: (n, 0, 0)),
                   pl.BlockSpec((1, S, C), lambda n: (n, 0, 0))),
        compiler_params=pltpu.CompilerParams(dimension_semantics=("parallel",)),
    )(xw)
    return to_canonical(pooled.reshape(N, h2, w2, C)), idx


def _maxunpool_kernel(p_ref, i_ref, o_ref):
    # p_ref: (1, S, C) bf16; i_ref: (1, S, C) int8; o_ref: (1, 4, S, C) scatter by window index.
    p = p_ref[0]
    idx = i_ref[0].astype(jnp.int32)             # widen before the vector compares
    zero = jnp.zeros_like(p)
    for k in range(4):
        o_ref[0, k] = jnp.where(idx == k, p, zero)


def maxunpool2x2(pc, idx, h2, w2):
    """Canonical (h2,w2) activation + int8 indices -> canonical (2*h2, 2*w2) activation."""
    N, _, C = pc.shape
    S = h2 * w2
    p = from_canonical(pc, h2, w2).reshape(N, S, C)
    ow = pl.pallas_call(
        _maxunpool_kernel,
        out_shape=jax.ShapeDtypeStruct((N, 4, S, C), p.dtype),
        grid=(N,),
        in_specs=[pl.BlockSpec((1, S, C), lambda n: (n, 0, 0)),
                  pl.BlockSpec((1, S, C), lambda n: (n, 0, 0))],
        out_specs=pl.BlockSpec((1, 4, S, C), lambda n: (n, 0, 0, 0)),
        compiler_params=pltpu.CompilerParams(dimension_semantics=("parallel",)),
    )(p, idx)
    x = (ow.reshape(N, 2, 2, h2, w2, C)
           .transpose(0, 3, 1, 4, 2, 5)
           .reshape(N, 2 * h2, 2 * w2, C))
    return to_canonical(x)


# --------------------------------------------------------------------------- params
_LAYER_DEFS = lambda input_nbr, label_nbr: [
    ("conv11", input_nbr, 64), ("conv12", 64, 64),
    ("conv21", 64, 128), ("conv22", 128, 128),
    ("conv31", 128, 256), ("conv32", 256, 256), ("conv33", 256, 256),
    ("conv41", 256, 512), ("conv42", 512, 512), ("conv43", 512, 512),
    ("conv51", 512, 512), ("conv52", 512, 512), ("conv53", 512, 512),
    ("conv53d", 512, 512), ("conv52d", 512, 512), ("conv51d", 512, 512),
    ("conv43d", 512, 512), ("conv42d", 512, 512), ("conv41d", 512, 256),
    ("conv33d", 256, 256), ("conv32d", 256, 256), ("conv31d", 256, 128),
    ("conv22d", 128, 128), ("conv21d", 128, 64),
    ("conv12d", 64, 64), ("conv11d", 64, label_nbr),
]


def prep_conv_params(w_hwio, b, bn_scale):
    """Fold the eval-mode BN scale into the weights/bias and pack the weights into the kernel
    layout (dx, dy*Cin + ci, Cout), bf16."""
    cin, cout = w_hwio.shape[2], w_hwio.shape[3]
    wk = (jnp.asarray(w_hwio, jnp.float32) * bn_scale)
    wk = wk.transpose(1, 0, 2, 3).reshape(3, 3 * cin, cout).astype(jnp.bfloat16)
    bk = (jnp.asarray(b, jnp.float32) * bn_scale).reshape(1, cout).astype(jnp.float32)
    return wk, bk


def init_params(key, input_nbr, label_nbr):
    eps = 1e-5
    bn_scale = 1.0 / np.sqrt(1.0 + eps)   # gamma=1, running_var=1, running_mean=0, beta=0
    params = {}
    for name, cin, cout in _LAYER_DEFS(input_nbr, label_nbr):
        key, kw, kb = jax.random.split(key, 3)
        fan_in = cin * 9
        bound = 1.0 / np.sqrt(fan_in)
        w = jax.random.uniform(kw, (3, 3, cin, cout), jnp.float32, -bound, bound)
        b = jax.random.uniform(kb, (cout,), jnp.float32, -bound, bound)
        cout_p = 128 if cout < 64 else cout          # lane-dense stores for the final layer
        if cout_p != cout:
            w = jnp.pad(w, ((0, 0), (0, 0), (0, 0), (0, cout_p - cout)))
            b = jnp.pad(b, ((0, cout_p - cout),))
        params[name] = prep_conv_params(w, b, bn_scale)
    return params


# -------------------------------------------------------------------------- forward
def cae_forward(x_nchw, params, label_nbr):
    x = jnp.transpose(x_nchw, (0, 2, 3, 1)).astype(jnp.bfloat16)   # NCHW -> NHWC bf16
    N, H, W, _ = x.shape
    h = to_canonical(x)

    def run(hc, hh, ww, names):
        for nm in names:
            w9, b = params[nm]
            hc = conv3x3_bn_relu(hc, w9, b, hh, ww)
        return hc

    # encoder
    h = run(h, H, W, ("conv11", "conv12"));                       h, i1 = maxpool2x2(h, H, W)
    h = run(h, H // 2, W // 2, ("conv21", "conv22"));             h, i2 = maxpool2x2(h, H // 2, W // 2)
    h = run(h, H // 4, W // 4, ("conv31", "conv32", "conv33"));   h, i3 = maxpool2x2(h, H // 4, W // 4)
    h = run(h, H // 8, W // 8, ("conv41", "conv42", "conv43"));   h, i4 = maxpool2x2(h, H // 8, W // 8)
    h = run(h, H // 16, W // 16, ("conv51", "conv52", "conv53")); h, i5 = maxpool2x2(h, H // 16, W // 16)
    # decoder
    h = maxunpool2x2(h, i5, H // 32, W // 32); h = run(h, H // 16, W // 16, ("conv53d", "conv52d", "conv51d"))
    h = maxunpool2x2(h, i4, H // 16, W // 16); h = run(h, H // 8, W // 8, ("conv43d", "conv42d", "conv41d"))
    h = maxunpool2x2(h, i3, H // 8, W // 8);   h = run(h, H // 4, W // 4, ("conv33d", "conv32d", "conv31d"))
    h = maxunpool2x2(h, i2, H // 4, W // 4);   h = run(h, H // 2, W // 2, ("conv22d", "conv21d"))
    h = maxunpool2x2(h, i1, H // 2, W // 2);   h = run(h, H, W, ("conv12d", "conv11d"))

    out = from_canonical(h, H, W)[..., :label_nbr]                # strip Cout padding
    return jnp.transpose(out, (0, 3, 1, 2)).astype(jnp.float32)   # NHWC -> NCHW


# ------------------------------------------------------------------------ self-checks
def _check_conv(cin, cout):
    key = jax.random.PRNGKey(42)
    k1, k2, k3 = jax.random.split(key, 3)
    N, H, W = 2, 8, 8
    bn_scale = 0.9
    x = jax.random.normal(k1, (N, H, W, cin), jnp.float32).astype(jnp.bfloat16)
    w = jax.random.normal(k2, (3, 3, cin, cout), jnp.float32) * 0.05
    b = jax.random.normal(k3, (cout,), jnp.float32) * 0.1
    wk, bk = prep_conv_params(w, b, bn_scale)
    out = from_canonical(conv3x3_bn_relu(to_canonical(x), wk, bk, H, W), H, W)
    # Reference conv uses the same bf16-quantized, BN-folded weights the kernel sees.
    w_q = wk.astype(jnp.float32).reshape(3, 3, cin, cout).transpose(1, 0, 2, 3)  # back to HWIO
    ref = lax.conv_general_dilated(
        x.astype(jnp.float32), w_q, window_strides=(1, 1), padding=((1, 1), (1, 1)),
        dimension_numbers=("NHWC", "HWIO", "NHWC"), precision=lax.Precision.HIGHEST)
    ref = jnp.maximum(ref + bk[0], 0.0)
    np.testing.assert_allclose(np.asarray(out.astype(jnp.float32)), np.asarray(ref),
                               rtol=0.05, atol=0.05)


def _check_pool():
    key = jax.random.PRNGKey(7)
    N, H, W, C = 2, 8, 8, 64
    x = jax.random.normal(key, (N, H, W, C), jnp.float32).astype(jnp.bfloat16)
    pc, idx = maxpool2x2(to_canonical(x), H, W)
    pooled = from_canonical(pc, H // 2, W // 2)
    x6 = x.reshape(N, H // 2, 2, W // 2, 2, C)
    ref_pool = jnp.max(jnp.max(x6, axis=4), axis=2)
    np.testing.assert_array_equal(np.asarray(pooled.astype(jnp.float32)),
                                  np.asarray(ref_pool.astype(jnp.float32)))
    up = from_canonical(maxunpool2x2(pc, idx, H // 2, W // 2), H, W)
    xw = x6.transpose(0, 2, 4, 1, 3, 5).reshape(N, 4, (H // 2) * (W // 2), C)
    amax = jnp.argmax(xw, axis=1)
    oh = amax[:, None, :, :] == jnp.arange(4)[None, :, None, None]
    ref_up_w = jnp.where(oh, jnp.max(xw, axis=1, keepdims=True), 0).astype(x.dtype)
    ref_up = (ref_up_w.reshape(N, 2, 2, H // 2, W // 2, C)
              .transpose(0, 3, 1, 4, 2, 5).reshape(N, H, W, C))
    np.testing.assert_array_equal(np.asarray(up.astype(jnp.float32)),
                                  np.asarray(ref_up.astype(jnp.float32)))


if __name__ == "__main__":
    input_nbr, label_nbr = 3, 2
    _check_conv(64, 64)        # per-dy matmul path (small Cin)
    _check_conv(128, 256)      # K-packed (dy -> K) path
    _check_pool()              # pool / unpool round trip (int8 indices)

    key = jax.random.PRNGKey(0)
    kx, kp = jax.random.split(key)
    # 32x32 is the smallest spatial size that survives the 5 pooling levels of the module.
    x = jax.random.normal(kx, (2, input_nbr, 32, 32), jnp.float32)
    params = init_params(kp, input_nbr, label_nbr)

    fwd = jax.jit(functools.partial(cae_forward, label_nbr=label_nbr))
    out = jax.block_until_ready(fwd(x, params))
    assert out.shape == (2, label_nbr, 32, 32), out.shape
    assert bool(jnp.all(jnp.isfinite(out)))
    print("KERNEL_OK")
</pallas_src>

<mosaic_0001>
module attributes {stable_mosaic.version = 11 : i64} {
  func.func @_conv_bn_relu_kernel(%arg0: i32, %arg1: i32, %arg2: memref<1x160x64xbf16, #tpu.memory_space<vmem>>, %arg3: memref<3x192x64xbf16, #tpu.memory_space<vmem>>, %arg4: memref<1x64xf32, #tpu.memory_space<vmem>>, %arg5: memref<1x160x64xbf16, #tpu.memory_space<vmem>>) attributes {dimension_semantics = [#tpu.dimension_semantics<parallel>, #tpu.dimension_semantics<parallel>], iteration_bounds = array<i64: 1, 2>, scalar_prefetch = 0 : i64, scratch_operands = 0 : i64, tpu.core_type = #tpu.core_type<tc>, window_params = [{transform_indices = @transform_0, window_bounds = array<i64: 1, 160, 64>}, {transform_indices = @transform_1, window_bounds = array<i64: 3, 192, 64>}, {transform_indices = @transform_2, window_bounds = array<i64: 1, 64>}, {transform_indices = @transform_3, window_bounds = array<i64: 1, 160, 64>}]} {
    %c0 = arith.constant 0 : index
    %c0_0 = arith.constant 0 : index
    %c0_1 = arith.constant 0 : index
    %0 = vector.load %arg2[%c0, %c0_0, %c0_1] : memref<1x160x64xbf16, #tpu.memory_space<vmem>>, vector<1x128x64xbf16>
    %1 = vector.shape_cast %0 : vector<1x128x64xbf16> to vector<128x64xbf16>
    %c0_2 = arith.constant 0 : index
    %c16 = arith.constant 16 : index
    %c0_3 = arith.constant 0 : index
    %2 = vector.load %arg2[%c0_2, %c16, %c0_3] : memref<1x160x64xbf16, #tpu.memory_space<vmem>>, vector<1x128x64xbf16>
    %3 = vector.shape_cast %2 : vector<1x128x64xbf16> to vector<128x64xbf16>
    %c0_4 = arith.constant 0 : index
    %c32 = arith.constant 32 : index
    %c0_5 = arith.constant 0 : index
    %4 = vector.load %arg2[%c0_4, %c32, %c0_5] : memref<1x160x64xbf16, #tpu.memory_space<vmem>>, vector<1x128x64xbf16>
    %5 = vector.shape_cast %4 : vector<1x128x64xbf16> to vector<128x64xbf16>
    %cst = arith.constant 0.000000e+00 : f32
    %6 = vector.broadcast %cst : f32 to vector<1x64xf32>
    %c0_6 = arith.constant 0 : index
    %c0_7 = arith.constant 0 : index
    %c0_8 = arith.constant 0 : index
    %7 = vector.load %arg3[%c0_6, %c0_7, %c0_8] : memref<3x192x64xbf16, #tpu.memory_space<vmem>>, vector<1x64x64xbf16>
    %8 = vector.shape_cast %7 : vector<1x64x64xbf16> to vector<64x64xbf16>
    %cst_9 = arith.constant dense<0.000000e+00> : vector<128x64xf32>
    %9 = tpu.matmul %1, %8, %cst_9 {dimension_numbers = #tpu.dot_dimension_numbers<[1], [0], [0], [1], [0, 0, 1, 1], [], []>} : vector<128x64xbf16>, vector<64x64xbf16>, vector<128x64xf32> -> vector<128x64xf32>
    %c0_10 = arith.constant 0 : index
    %c64 = arith.constant 64 : index
    %c0_11 = arith.constant 0 : index
    %10 = vector.load %arg3[%c0_10, %c64, %c0_11] : memref<3x192x64xbf16, #tpu.memory_space<vmem>>, vector<1x64x64xbf16>
    %11 = vector.shape_cast %10 : vector<1x64x64xbf16> to vector<64x64xbf16>
    %cst_12 = arith.constant dense<0.000000e+00> : vector<128x64xf32>
    %12 = tpu.matmul %3, %11, %cst_12 {dimension_numbers = #tpu.dot_dimension_numbers<[1], [0], [0], [1], [0, 0, 1, 1], [], []>} : vector<128x64xbf16>, vector<64x64xbf16>, vector<128x64xf32> -> vector<128x64xf32>
    %13 = arith.addf %9, %12 : vector<128x64xf32>
    %c0_13 = arith.constant 0 : index
    %c128 = arith.constant 128 : index
    %c0_14 = arith.constant 0 : index
    %14 = vector.load %arg3[%c0_13, %c128, %c0_14] : memref<3x192x64xbf16, #tpu.memory_space<vmem>>, vector<1x64x64xbf16>
    %15 = vector.shape_cast %14 : vector<1x64x64xbf16> to vector<64x64xbf16>
    %cst_15 = arith.constant dense<0.000000e+00> : vector<128x64xf32>
    %16 = tpu.matmul %5, %15, %cst_15 {dimension_numbers = #tpu.dot_dimension_numbers<[1], [0], [0], [1], [0, 0, 1, 1], [], []>} : vector<128x64xbf16>, vector<64x64xbf16>, vector<128x64xf32> -> vector<128x64xf32>
    %17 = arith.addf %13, %16 : vector<128x64xf32>
    %18 = vector.extract_strided_slice %17 {offsets = [0, 0], sizes = [127, 64], strides = [1, 1]} : vector<128x64xf32> to vector<127x64xf32>
    %19 = tpu.concatenate %6, %18 in 0 : vector<1x64xf32>, vector<127x64xf32> -> vector<128x64xf32>
    %c1 = arith.constant 1 : index
    %c0_16 = arith.constant 0 : index
    %c0_17 = arith.constant 0 : index
    %20 = vector.load %arg3[%c1, %c0_16, %c0_17] : memref<3x192x64xbf16, #tpu.memory_space<vmem>>, vector<1x64x64xbf16>
    %21 = vector.shape_cast %20 : vector<1x64x64xbf16> to vector<64x64xbf16>
    %cst_18 = arith.constant dense<0.000000e+00> : vector<128x64xf32>
    %22 = tpu.matmul %1, %21, %cst_18 {dimension_numbers = #tpu.dot_dimension_numbers<[1], [0], [0], [1], [0, 0, 1, 1], [], []>} : vector<128x64xbf16>, vector<64x64xbf16>, vector<128x64xf32> -> vector<128x64xf32>
    %c1_19 = arith.constant 1 : index
    %c64_20 = arith.constant 64 : index
    %c0_21 = arith.constant 0 : index
    %23 = vector.load %arg3[%c1_19, %c64_20, %c0_21] : memref<3x192x64xbf16, #tpu.memory_space<vmem>>, vector<1x64x64xbf16>
    %24 = vector.shape_cast %23 : vector<1x64x64xbf16> to vector<64x64xbf16>
    %cst_22 = arith.constant dense<0.000000e+00> : vector<128x64xf32>
    %25 = tpu.matmul %3, %24, %cst_22 {dimension_numbers = #tpu.dot_dimension_numbers<[1], [0], [0], [1], [0, 0, 1, 1], [], []>} : vector<128x64xbf16>, vector<64x64xbf16>, vector<128x64xf32> -> vector<128x64xf32>
    %26 = arith.addf %22, %25 : vector<128x64xf32>
    %c1_23 = arith.constant 1 : index
    %c128_24 = arith.constant 128 : index
    %c0_25 = arith.constant 0 : index
    %27 = vector.load %arg3[%c1_23, %c128_24, %c0_25] : memref<3x192x64xbf16, #tpu.memory_space<vmem>>, vector<1x64x64xbf16>
    %28 = vector.shape_cast %27 : vector<1x64x64xbf16> to vector<64x64xbf16>
    %cst_26 = arith.constant dense<0.000000e+00> : vector<128x64xf32>
    %29 = tpu.matmul %5, %28, %cst_26 {dimension_numbers = #tpu.dot_dimension_numbers<[1], [0], [0], [1], [0, 0, 1, 1], [], []>} : vector<128x64xbf16>, vector<64x64xbf16>, vector<128x64xf32> -> vector<128x64xf32>
    %30 = arith.addf %26, %29 : vector<128x64xf32>
    %31 = arith.addf %19, %30 : vector<128x64xf32>
    %c2 = arith.constant 2 : index
    %c0_27 = arith.constant 0 : index
    %c0_28 = arith.constant 0 : index
    %32 = vector.load %arg3[%c2, %c0_27, %c0_28] : memref<3x192x64xbf16, #tpu.memory_space<vmem>>, vector<1x64x64xbf16>
    %33 = vector.shape_cast %32 : vector<1x64x64xbf16> to vector<64x64xbf16>
    %cst_29 = arith.constant dense<0.000000e+00> : vector<128x64xf32>
    %34 = tpu.matmul %1, %33, %cst_29 {dimension_numbers = #tpu.dot_dimension_numbers<[1], [0], [0], [1], [0, 0, 1, 1], [], []>} : vector<128x64xbf16>, vector<64x64xbf16>, vector<128x64xf32> -> vector<128x64xf32>
    %c2_30 = arith.constant 2 : index
    %c64_31 = arith.constant 64 : index
    %c0_32 = arith.constant 0 : index
    %35 = vector.load %arg3[%c2_30, %c64_31, %c0_32] : memref<3x192x64xbf16, #tpu.memory_space<vmem>>, vector<1x64x64xbf16>
    %36 = vector.shape_cast %35 : vector<1x64x64xbf16> to vector<64x64xbf16>
    %cst_33 = arith.constant dense<0.000000e+00> : vector<128x64xf32>
    %37 = tpu.matmul %3, %36, %cst_33 {dimension_numbers = #tpu.dot_dimension_numbers<[1], [0], [0], [1], [0, 0, 1, 1], [], []>} : vector<128x64xbf16>, vector<64x64xbf16>, vector<128x64xf32> -> vector<128x64xf32>
    %38 = arith.addf %34, %37 : vector<128x64xf32>
    %c2_34 = arith.constant 2 : index
    %c128_35 = arith.constant 128 : index
    %c0_36 = arith.constant 0 : index
    %39 = vector.load %arg3[%c2_34, %c128_35, %c0_36] : memref<3x192x64xbf16, #tpu.memory_space<vmem>>, vector<1x64x64xbf16>
    %40 = vector.shape_cast %39 : vector<1x64x64xbf16> to vector<64x64xbf16>
    %cst_37 = arith.constant dense<0.000000e+00> : vector<128x64xf32>
    %41 = tpu.matmul %5, %40, %cst_37 {dimension_numbers = #tpu.dot_dimension_numbers<[1], [0], [0], [1], [0, 0, 1, 1], [], []>} : vector<128x64xbf16>, vector<64x64xbf16>, vector<128x64xf32> -> vector<128x64xf32>
    %42 = arith.addf %38, %41 : vector<128x64xf32>
    %43 = vector.extract_strided_slice %42 {offsets = [1, 0], sizes = [127, 64], strides = [1, 1]} : vector<128x64xf32> to vector<127x64xf32>
    %44 = tpu.concatenate %43, %6 in 0 : vector<127x64xf32>, vector<1x64xf32> -> vector<128x64xf32>
    %45 = arith.addf %31, %44 : vector<128x64xf32>
    %46 = tpu.iota {dimensions = array<i32: 1>} : vector<8x16x1xi32>
    %47 = vector.shape_cast %46 : vector<8x16x1xi32> to vector<128x1xi32>
    %c1_i32 = arith.constant 1 : i32
    %48 = vector.broadcast %c1_i32 : i32 to vector<128x1xi32>
    %49 = arith.cmpi sge, %47, %48 : vector<128x1xi32>
    %c8_i32 = arith.constant 8 : i32
    %50 = vector.broadcast %c8_i32 : i32 to vector<128x1xi32>
    %51 = arith.cmpi sle, %47, %50 : vector<128x1xi32>
    %52 = arith.andi %49, %51 : vector<128x1xi1>
    %c0_38 = arith.constant 0 : index
    %c0_39 = arith.constant 0 : index
    %53 = vector.load %arg4[%c0_38, %c0_39] : memref<1x64xf32, #tpu.memory_space<vmem>>, vector<1x64xf32>
    %54 = vector.broadcast %53 : vector<1x64xf32> to vector<128x64xf32>
    %55 = arith.addf %45, %54 : vector<128x64xf32>
    %cst_40 = arith.constant 0.000000e+00 : f32
    %56 = vector.broadcast %cst_40 : f32 to vector<128x64xf32>
    %57 = arith.maximumf %55, %56 : vector<128x64xf32>
    %cst_41 = arith.constant 0.000000e+00 : f32
    %58 = vector.shape_cast %52 : vector<128x1xi1> to vector<128x1xi1>
    %59 = vector.broadcast %58 : vector<128x1xi1> to vector<128x64xi1>
    %60 = vector.broadcast %cst_41 : f32 to vector<128x64xf32>
    %61 = arith.select %59, %57, %60 : vector<128x64xi1>, vector<128x64xf32>
    %62 = arith.truncf %61 : vector<128x64xf32> to vector<128x64xbf16>
    %cst_42 = arith.constant 0.000000e+00 : bf16
    %63 = vector.broadcast %cst_42 : bf16 to vector<16x64xbf16>
    %c0_43 = arith.constant 0 : index
    %c0_44 = arith.constant 0 : index
    %c0_45 = arith.constant 0 : index
    %64 = vector.load %arg5[%c0_43, %c0_44, %c0_45] : memref<1x160x64xbf16, #tpu.memory_space<vmem>>, vector<1x16x64xbf16>
    %65 = vector.shape_cast %64 : vector<1x16x64xbf16> to vector<16x64xbf16>
    %66 = vector.shape_cast %63 : vector<16x64xbf16> to vector<1x16x64xbf16>
    tpu.vector_store %arg5[%c0_43, %c0_44, %c0_45], %66 {strides = array<i32>} : memref<1x160x64xbf16, #tpu.memory_space<vmem>>, vector<1x16x64xbf16>,
    %c0_46 = arith.constant 0 : index
    %c16_47 = arith.constant 16 : index
    %c0_48 = arith.constant 0 : index
    %67 = vector.load %arg5[%c0_46, %c16_47, %c0_48] : memref<1x160x64xbf16, #tpu.memory_space<vmem>>, vector<1x128x64xbf16>
    %68 = vector.shape_cast %67 : vector<1x128x64xbf16> to vector<128x64xbf16>
    %69 = vector.shape_cast %62 : vector<128x64xbf16> to vector<1x128x64xbf16>
    tpu.vector_store %arg5[%c0_46, %c16_47, %c0_48], %69 {strides = array<i32>} : memref<1x160x64xbf16, #tpu.memory_space<vmem>>, vector<1x128x64xbf16>,
    %c0_49 = arith.constant 0 : index
    %c144 = arith.constant 144 : index
    %c0_50 = arith.constant 0 : index
    %70 = vector.load %arg5[%c0_49, %c144, %c0_50] : memref<1x160x64xbf16, #tpu.memory_space<vmem>>, vector<1x16x64xbf16>
    %71 = vector.shape_cast %70 : vector<1x16x64xbf16> to vector<16x64xbf16>
    %72 = vector.shape_cast %63 : vector<16x64xbf16> to vector<1x16x64xbf16>
    tpu.vector_store %arg5[%c0_49, %c144, %c0_50], %72 {strides = array<i32>} : memref<1x160x64xbf16, #tpu.memory_space<vmem>>, vector<1x16x64xbf16>,
    return
  }
  func.func @transform_0(%arg0: i32, %arg1: i32) -> (i32, i32, i32) {
    %c0_i32 = arith.constant 0 : i32
    %c0_i32_0 = arith.constant 0 : i32
    %c0_i32_1 = arith.constant 0 : i32
    return %arg1, %c0_i32, %c0_i32_0 : i32, i32, i32
  }
  func.func @transform_1(%arg0: i32, %arg1: i32) -> (i32, i32, i32) {
    %c0_i32 = arith.constant 0 : i32
    %c0_i32_0 = arith.constant 0 : i32
    %c0_i32_1 = arith.constant 0 : i32
    return %c0_i32, %c0_i32_0, %arg0 : i32, i32, i32
  }
  func.func @transform_2(%arg0: i32, %arg1: i32) -> (i32, i32) {
    %c0_i32 = arith.constant 0 : i32
    %c0_i32_0 = arith.constant 0 : i32
    return %c0_i32, %arg0 : i32, i32
  }
  func.func @transform_3(%arg0: i32, %arg1: i32) -> (i32, i32, i32) {
    %c0_i32 = arith.constant 0 : i32
    %c0_i32_0 = arith.constant 0 : i32
    return %arg1, %c0_i32, %arg0 : i32, i32, i32
  }
}

</mosaic_0001>

<bundles_post_ra>
// kernel: tpu_custom_call.1
= control target key start
LH: loop header
LB: loop body
LE: loop exit
PB: predicated region body
PF: predicated region fallthrough
CT: control target
= control target key end

     0   :  { %s1917_s12 = smov 0   ;;  %s1919_s13 = smov 0   ;;  %s2511_s0 = inlined_call_operand.vmem [shape: bf16[2,160,64], index: 0, kind: input, shape index: {}]   ;;  %s2512_s1 = inlined_call_operand.vmem [shape: bf16[3,192,64], index: 1, kind: input, shape index: {}]   ;;  %s2513_s2 = inlined_call_operand.vmem [shape: f32[1,64], index: 2, kind: input, shape index: {}]   ;;  %s2514_s3 = inlined_call_operand.vmem [shape: bf16[2,160,64], index: 3, kind: output, shape index: {}]  }
   0x1   :  { %s1921_s14 = smov 0  }
   0x2 LB: > { %s22_s15 = sadd.s32 1, %s1890_s13  ;;  %p1478_p0 = scmp.ge.s32.totalorder %s1894_s14, 1  ;;  %s1894_s14 = sphi %s1921_s14, %s13_s14   ;;  %s1890_s13 = sphi %s1919_s13, %s2516_s13   ;;  %s1886_s12 = sphi %s1917_s12, %s2515_s12  }
   0x3   : > { %p23_p1 = scmp.ge.s32.totalorder %s22_s15, 2  ;;  %p168_p2 = scmp.lt.s32.totalorder %s1894_s14, 3 }
   0x5   : > { %s2518_s15 = smov (%p23_p1, %s22_s15), 0  ;;  %p169_p3 = pnand %p1478_p0, %p168_p2 }
   0x6   : > { %p202_p4 = scmp.lt.s32.totalorder (!%p169_p3), %s1886_s12, 1 }
   0x7   : > { %172 = sbr.rel (%p169_p3) target bundleno = 459 (0x1cb), region = 32 }
   0xc   : > { %v1804_v0 = vld [vmem:[%s2512_s1 + $0x38] sm:$0xff]  ;;  %v1803_v1 = vld [vmem:[%s2512_s1 + $0x30] sm:$0xff]  ;;  %s2520_s12 = smov (!%p202_p4, %s1886_s12), 1  ;;  %v1802_v2 = vld [vmem:[%s2512_s1 + $0x28] sm:$0xff]  ;;  %vm323_vm0 = vcmask 523264   ;;  %vm599_vm1 = vcmask 1040384  }
   0xd   : > { %352 = vmatpush.bf16.msra.mxu0 %v1804_v0  ;;  %1833 = vmatpush.bf16.msra.mxu1 %v1804_v0  ;;  %s1845_s22 = smul.u32 80, %s2520_s12  ;;  %v1801_v3 = vld [vmem:[%s2512_s1 + $0x20] sm:$0xff]  ;;  %v1808_v4 = vld [vmem:[%s2512_s1 + $0x58] sm:$0xff]  ;;  %v1807_v12 = vld [vmem:[%s2512_s1 + $0x50] sm:$0xff]  ;;  %vm1346_vm2 = vcmask 519168   ;;  %vm1200_vm3 = vcmask 1046528  }
   0xe   : > { %1834 = vmatpush.bf16.msra.mxu2 %v1804_v0  ;;  %1835 = vmatpush.bf16.msra.mxu3 %v1804_v0  ;;  %v1816_v5 = vld [vmem:[%s2512_s1 + $0x98] sm:$0xff]  ;;  %v1815_v13 = vld [vmem:[%s2512_s1 + $0x90] sm:$0xff]  ;;  %v1806_v16 = vld [vmem:[%s2512_s1 + $0x48] sm:$0xff] }
   0xf   : > { %s1955_s27 = scalar_lea.vmem %s2511_s0, %s1845_s22  ;;  %v1812_v10 = vld [vmem:[%s2512_s1 + $0x78] sm:$0xff]  ;;  %v1811_v14 = vld [vmem:[%s2512_s1 + $0x70] sm:$0xff]  ;;  %v1814_v17 = vld [vmem:[%s2512_s1 + $0x88] sm:$0xff]  ;;  %s2345_s30 = scalar_lea.vmem %s2514_s3, %s1845_s22 }
  0x10   : > { %v1964_v6 = vld [vmem:[%s1955_s27 + $0x8] sm:$0xff]  ;;  %v1967_v7 = vld [vmem:[%s1955_s27 + $0x18] sm:$0xff]  ;;  %v1799_v15 = vld [vmem:[%s2512_s1 + $0x10] sm:$0xff] }
  0x11   : > { %353 = vmatpush.bf16.msra.mxu0 %v1803_v1  ;;  %1836 = vmatpush.bf16.msra.mxu1 %v1803_v1  ;;  %v1970_v8 = vld [vmem:[%s1955_s27 + $0x28] sm:$0xff]  ;;  %v1973_v9 = vld [vmem:[%s1955_s27 + $0x38] sm:$0xff]  ;;  %v1805_v20 = vld [vmem:[%s2512_s1 + $0x40] sm:$0xff] }
  0x12   : > { %1837 = vmatpush.bf16.msra.mxu2 %v1803_v1  ;;  %1838 = vmatpush.bf16.msra.mxu3 %v1803_v1  ;;  %v1800_v11 = vld [vmem:[%s2512_s1 + $0x18] sm:$0xff]  ;;  %v1810_v18 = vld [vmem:[%s2512_s1 + $0x68] sm:$0xff]  ;;  %v1813_v21 = vld [vmem:[%s2512_s1 + $0x80] sm:$0xff] }
  0x13   : > { %v1798_v19 = vld [vmem:[%s2512_s1 + $0x8] sm:$0xff]  ;;  %v1828_v22 = vld [vmem:[%s2512_s1 + $0xf8] sm:$0xff]  ;;  %v1797_v24 = vld [vmem:[%s2512_s1] sm:$0xff] }
  0x14   : > { %v1824_v23 = vld [vmem:[%s2512_s1 + $0xd8] sm:$0xff]  ;;  %v1809_v25 = vld [vmem:[%s2512_s1 + $0x60] sm:$0xff]  ;;  %v2038_v28 = vld [vmem:[%s1955_s27 + $0x10] sm:$0xff] }
  0x15   : > { %354 = vmatpush.bf16.msra.mxu0 %v1802_v2  ;;  %1839 = vmatpush.bf16.msra.mxu1 %v1802_v2  ;;  %v1832_v26 = vld [vmem:[%s2512_s1 + $0x118] sm:$0xff]  ;;  %v2041_v29 = vld [vmem:[%s1955_s27 + $0x20] sm:$0xff]  ;;  %v2044_v30 = vld [vmem:[%s1955_s27 + $0x30] sm:$0xff] }
  0x16   : > { %1840 = vmatpush.bf16.msra.mxu2 %v1802_v2  ;;  %1841 = vmatpush.bf16.msra.mxu3 %v1802_v2  ;;  %v1820_v27 = vld [vmem:[%s2512_s1 + $0xb8] sm:$0xff]  ;;  %v2047_v31 = vld [vmem:[%s1955_s27 + $0x40] sm:$0xff]  ;;  %v1827_v33 = vld [vmem:[%s2512_s1 + $0xf0] sm:$0xff] }
  0x17   : > { %v2058_v32 = vld [vmem:[%s1955_s27] sm:$0xff]  ;;  %v1823_v34 = vld [vmem:[%s2512_s1 + $0xd0] sm:$0xff]  ;;  %v1826_v37 = vld [vmem:[%s2512_s1 + $0xe8] sm:$0xff] }
  0x18   : > { %v1831_v35 = vld [vmem:[%s2512_s1 + $0x110] sm:$0xff]  ;;  %v1822_v38 = vld [vmem:[%s2512_s1 + $0xc8] sm:$0xff]  ;;  %v1825_v41 = vld [vmem:[%s2512_s1 + $0xe0] sm:$0xff] }
  0x19   : > { %355 = vmatpush.bf16.msra.mxu0 %v1801_v3  ;;  %1842 = vmatpush.bf16.msra.mxu1 %v1801_v3  ;;  %v1819_v36 = vld [vmem:[%s2512_s1 + $0xb0] sm:$0xff]  ;;  %v1830_v39 = vld [vmem:[%s2512_s1 + $0x108] sm:$0xff]  ;;  %v1821_v42 = vld [vmem:[%s2512_s1 + $0xc0] sm:$0xff] }
  0x1a   : > { %1843 = vmatpush.bf16.msra.mxu2 %v1801_v3  ;;  %1844 = vmatpush.bf16.msra.mxu3 %v1801_v3  ;;  %v1818_v40 = vld [vmem:[%s2512_s1 + $0xa8] sm:$0xff]  ;;  %v1829_v43 = vld [vmem:[%s2512_s1 + $0x100] sm:$0xff] }
  0x1b   : > { %v1817_v44 = vld [vmem:[%s2512_s1 + $0xa0] sm:$0xff]  ;;  %v2167_v55 = vld [vmem:[%s1955_s27 + $0x48] sm:$0xff] }
  0x1c   : > { %1529 = vmatmul.msk.bf16.vlgmr.msra.gmra.mxu0 %vm323_vm0, %v1964_v6  ;;  %1531 = vmatmul.msk.bf16.vlgmr.msra.gmra.mxu1 %vm323_vm0, %v1967_v7 }
  0x1d   : > { %1533 = vmatmul.msk.bf16.vlgmr.msra.gmra.mxu2 %vm323_vm0, %v1970_v8  ;;  %1535 = vmatmul.msk.bf16.vlgmr.msra.gmra.mxu3 %vm323_vm0, %v1973_v9 }
  0x1e   : > { %522 = vmatpush.bf16.msrb.mxu2 %v1808_v4  ;;  %693 = vmatpush.bf16.msrb.mxu3 %v1816_v5 }
  0x1f   : > { %766 = vmatpush.bf16.msrb.mxu0 %v1812_v10  ;;  %433 = vmatpush.bf16.msrb.mxu1 %v1800_v11 }
  0x22   : > { %523 = vmatpush.bf16.msrb.mxu2 %v1807_v12  ;;  %694 = vmatpush.bf16.msrb.mxu3 %v1815_v13 }
  0x23   : > { %767 = vmatpush.bf16.msrb.mxu0 %v1811_v14  ;;  %434 = vmatpush.bf16.msrb.mxu1 %v1799_v15 }
  0x26   : > { %524 = vmatpush.bf16.msrb.mxu2 %v1806_v16  ;;  %695 = vmatpush.bf16.msrb.mxu3 %v1814_v17 }
  0x27   : > { %768 = vmatpush.bf16.msrb.mxu0 %v1810_v18  ;;  %435 = vmatpush.bf16.msrb.mxu1 %v1798_v19 }
  0x2a   : > { %525 = vmatpush.bf16.msrb.mxu2 %v1805_v20  ;;  %696 = vmatpush.bf16.msrb.mxu3 %v1813_v21 }
  0x2b   : > { %436 = vmatpush.bf16.msrb.mxu1 %v1797_v24  ;;  %769 = vmatpush.bf16.msrb.mxu0 %v1809_v25 }
  0x2c   : > { %1530 = vmatmul.msk.bf16.gmra.mxu0 %vm323_vm0, %v2038_v28  ;;  %1532 = vmatmul.msk.bf16.gmra.mxu1 %vm323_vm0, %v2041_v29 }
  0x2d   : > { %1534 = vmatmul.msk.bf16.gmra.mxu2 %vm323_vm0, %v2044_v30  ;;  %1536 = vmatmul.msk.bf16.gmra.mxu3 %vm323_vm0, %v2047_v31 }
  0x2e   : > { %969 = vmatpush.bf16.msra.mxu2 %v1828_v22  ;;  %1042 = vmatpush.bf16.msra.mxu3 %v1824_v23 }
  0x2f   : > { %1123 = vmatpush.bf16.msra.mxu0 %v1832_v26  ;;  %847 = vmatpush.bf16.msra.mxu1 %v1820_v27 }
  0x32   : > { %970 = vmatpush.bf16.msra.mxu2 %v1827_v33  ;;  %1043 = vmatpush.bf16.msra.mxu3 %v1823_v34 }
  0x33   : > { %1124 = vmatpush.bf16.msra.mxu0 %v1831_v35  ;;  %848 = vmatpush.bf16.msra.mxu1 %v1819_v36 }
  0x36   : > { %971 = vmatpush.bf16.msra.mxu2 %v1826_v37  ;;  %1044 = vmatpush.bf16.msra.mxu3 %v1822_v38 }
  0x37   : > { %1125 = vmatpush.bf16.msra.mxu0 %v1830_v39  ;;  %849 = vmatpush.bf16.msra.mxu1 %v1818_v40 }
  0x3a   : > { %972 = vmatpush.bf16.msra.mxu2 %v1825_v41  ;;  %1045 = vmatpush.bf16.msra.mxu3 %v1821_v42 }
  0x3b   : > { %1126 = vmatpush.bf16.msra.mxu0 %v1829_v43  ;;  %850 = vmatpush.bf16.msra.mxu1 %v1817_v44 }
  0x3c   : > { %1557 = vmatmul.msk.bf16.vlgmr.msrb.gmra.mxu1 %vm323_vm0, %v2058_v32  ;;  %1649 = vmatmul.msk.bf16.vlgmr.msrb.gmra.mxu0 %vm323_vm0, %v2058_v32 }
  0x3d   : > { %1585 = vmatmul.msk.bf16.vlgmr.msrb.gmra.mxu2 %vm323_vm0, %v2038_v28  ;;  %1625 = vmatmul.msk.bf16.vlgmr.msrb.gmra.mxu3 %vm323_vm0, %v1964_v6 }
  0x4c   : > { %1558 = vmatmul.msk.bf16.gmra.mxu1 %vm323_vm0, %v1964_v6  ;;  %1650 = vmatmul.msk.bf16.gmra.mxu0 %vm323_vm0, %v1964_v6 }
  0x4d   : > { %1586 = vmatmul.msk.bf16.gmra.mxu2 %vm323_vm0, %v1967_v7  ;;  %1626 = vmatmul.msk.bf16.gmra.mxu3 %vm323_vm0, %v2038_v28 }
  0x5c   : > { %1559 = vmatmul.msk.bf16.gmra.mxu1 %vm323_vm0, %v2038_v28  ;;  %1651 = vmatmul.msk.bf16.gmra.mxu0 %vm323_vm0, %v2038_v28 }
  0x5d   : > { %1587 = vmatmul.msk.bf16.gmra.mxu2 %vm323_vm0, %v2041_v29  ;;  %1627 = vmatmul.msk.bf16.gmra.mxu3 %vm323_vm0, %v1967_v7 }
  0x6c   : > { %1560 = vmatmul.msk.bf16.gmra.mxu1 %vm323_vm0, %v1967_v7  ;;  %1652 = vmatmul.msk.bf16.gmra.mxu0 %vm323_vm0, %v1967_v7 }
  0x6d   : > { %1588 = vmatmul.msk.bf16.gmra.mxu2 %vm323_vm0, %v1970_v8  ;;  %1628 = vmatmul.msk.bf16.gmra.mxu3 %vm323_vm0, %v2041_v29 }
  0x7c   : > { %1561 = vmatmul.msk.bf16.gmra.mxu1 %vm323_vm0, %v2041_v29  ;;  %1653 = vmatmul.msk.bf16.gmra.mxu0 %vm323_vm0, %v2041_v29 }
  0x7d   : > { %1589 = vmatmul.msk.bf16.gmra.mxu2 %vm323_vm0, %v2044_v30  ;;  %1629 = vmatmul.msk.bf16.gmra.mxu3 %vm323_vm0, %v1970_v8 }
  0x8c   : > { %1562 = vmatmul.msk.bf16.gmra.mxu1 %vm323_vm0, %v1970_v8  ;;  %1654 = vmatmul.msk.bf16.gmra.mxu0 %vm323_vm0, %v1970_v8 }
  0x8d   : > { %1590 = vmatmul.msk.bf16.gmra.mxu2 %vm323_vm0, %v1973_v9  ;;  %1630 = vmatmul.msk.bf16.gmra.mxu3 %vm323_vm0, %v2044_v30 }
  0x99   : > { %v357_v45 = vpop.f32.mrf.mxu0  ;;  %v2144_v46 = vpop.f32.mrf.mxu1 }
  0x9c   : > { %1563 = vmatmul.msk.bf16.gmra.mxu1 %vm323_vm0, %v2044_v30  ;;  %1655 = vmatmul.msk.bf16.gmra.mxu0 %vm323_vm0, %v2044_v30 }
  0x9d   : > { %1591 = vmatmul.msk.bf16.gmra.mxu2 %vm323_vm0, %v2047_v31  ;;  %1631 = vmatmul.msk.bf16.gmra.mxu3 %vm323_vm0, %v1973_v9 }
  0xa0   : > { %v2154_v47 = vpop.f32.mrf.mxu2  ;;  %v2156_v48 = vpop.f32.mrf.mxu3 }
  0xa1   : > { %v359_v49 = vpop.f32.mrf.mxu0  ;;  %v2158_v50 = vpop.f32.mrf.mxu1 }
  0xa8   : > { %v2160_v51 = vpop.f32.mrf.mxu2  ;;  %v2162_v52 = vpop.f32.mrf.mxu3 }
  0xa9   : > { %v362_v53 = vpop.f32.mrf.mxu0  ;;  %v2164_v54 = vpop.f32.mrf.mxu1 }
  0xac   : > { %1564 = vmatmul.msk.bf16.gmra.mxu1 %vm323_vm0, %v1973_v9  ;;  %1656 = vmatmul.msk.bf16.gmra.mxu0 %vm323_vm0, %v1973_v9 }
  0xad   : > { %1592 = vmatmul.msk.bf16.gmra.mxu2 %vm323_vm0, %v2167_v55  ;;  %1632 = vmatmul.msk.bf16.gmra.mxu3 %vm323_vm0, %v2047_v31 }
  0xb0   : > { %v2177_v56 = vpop.f32.mrf.mxu2  ;;  %v2179_v57 = vpop.f32.mrf.mxu3 }
  0xb1   : > { %v364_v58 = vpop.f32.mrf.mxu0  ;;  %v2181_v59 = vpop.f32.mrf.mxu1 }
  0xb8   : > { %v2183_v60 = vpop.f32.mrf.mxu2  ;;  %v2185_v61 = vpop.f32.mrf.mxu3 }
  0xb9   : > { %v438_v62 = vpop.f32.mrf.mxu1  ;;  %v771_v63 = vpop.f32.mrf.mxu0 }
  0xba   : > { %v439_v0 = vadd.f32 %v438_v62, %v357_v45 }
  0xbc   : > { %1681 = vmatmul.msk.bf16.vlgmr.msra.gmra.mxu1 %vm323_vm0, %v2038_v28  ;;  %1777 = vmatmul.msk.bf16.vlgmr.msra.gmra.mxu0 %vm323_vm0, %v2038_v28 }
  0xbd   : > { %1721 = vmatmul.msk.bf16.vlgmr.msra.gmra.mxu2 %vm323_vm0, %v1964_v6  ;;  %1745 = vmatmul.msk.bf16.vlgmr.msra.gmra.mxu3 %vm323_vm0, %v2058_v32 }
  0xc0   : > { %v527_v1 = vpop.f32.mrf.mxu2  ;;  %v698_v2 = vpop.f32.mrf.mxu3 }
  0xc1   : > { %v2195_v3 = vadd.f32 %v527_v1, %v439_v0  ;;  %v2197_v4 = vadd.f32 %v771_v63, %v698_v2  ;;  %v440_v5 = vpop.f32.mrf.mxu1  ;;  %v773_v10 = vpop.f32.mrf.mxu0 }
  0xc2   : > { %v441_v11 = vadd.f32 %v440_v5, %v359_v49 }
  0xc3   : > { %v600_v19 = vrot.slane %v2195_v3, 7 }
  0xc8   : > { %v529_v12 = vpop.f32.mrf.mxu2  ;;  %v700_v13 = vpop.f32.mrf.mxu3 }
  0xc9   : > { %v568_v14 = vadd.f32 %v529_v12, %v441_v11  ;;  %v2199_v15 = vadd.f32 %v773_v10, %v700_v13  ;;  %v443_v16 = vpop.f32.mrf.mxu1  ;;  %v776_v17 = vpop.f32.mrf.mxu0 }
  0xca   : > { %v444_v18 = vadd.f32 %v443_v16, %v362_v53 }
  0xcb   : > { %v601_v20 = vrot.slane %v568_v14, 7 }
  0xcc   : > { %1682 = vmatmul.msk.bf16.gmra.mxu1 %vm323_vm0, %v1967_v7  ;;  %1778 = vmatmul.msk.bf16.gmra.mxu0 %vm323_vm0, %v1967_v7 }
  0xcd   : > { %1722 = vmatmul.msk.bf16.gmra.mxu2 %vm323_vm0, %v2038_v28  ;;  %1746 = vmatmul.msk.bf16.gmra.mxu3 %vm323_vm0, %v1964_v6  ;;  %v2213_v21 = vsel %vm599_vm1, %v600_v19, %v601_v20 }
  0xd0   : > { %v532_v22 = vpop.f32.mrf.mxu2  ;;  %v703_v23 = vpop.f32.mrf.mxu3 }
  0xd1   : > { %v569_v24 = vadd.f32 %v532_v22, %v444_v18  ;;  %v2215_v25 = vadd.f32 %v776_v17, %v703_v23  ;;  %v445_v26 = vpop.f32.mrf.mxu1  ;;  %v778_v27 = vpop.f32.mrf.mxu0 }
  0xd2   : > { %v446_v32 = vadd.f32 %v445_v26, %v364_v58 }
  0xd3   : > { %v603_v33 = vrot.slane %v569_v24, 7 }
  0xd5   : > { %v2218_v34 = vsel %vm599_vm1, %v601_v20, %v603_v33 }
  0xd8   : > { %v534_v35 = vpop.f32.mrf.mxu2  ;;  %v705_v36 = vpop.f32.mrf.mxu3 }
  0xd9   : > { %v570_v6 = vadd.f32 %v534_v35, %v446_v32  ;;  %v2220_v37 = vadd.f32 %v778_v27, %v705_v36  ;;  %v448_v38 = vpop.f32.mrf.mxu1  ;;  %v781_v39 = vpop.f32.mrf.mxu0 }
  0xda   : > { %v449_v40 = vadd.f32 %v448_v38, %v2144_v46 }
  0xdb   : > { %v605_v41 = vrot.slane %v570_v6, 7 }
  0xdc   : > { %1683 = vmatmul.msk.bf16.gmra.mxu1 %vm323_vm0, %v2041_v29  ;;  %1779 = vmatmul.msk.bf16.gmra.mxu0 %vm323_vm0, %v2041_v29 }
  0xdd   : > { %1723 = vmatmul.msk.bf16.gmra.mxu2 %vm323_vm0, %v1967_v7  ;;  %1747 = vmatmul.msk.bf16.gmra.mxu3 %vm323_vm0, %v2038_v28  ;;  %v2232_v42 = vsel %vm599_vm1, %v603_v33, %v605_v41 }
  0xe0   : > { %v537_v43 = vpop.f32.mrf.mxu2  ;;  %v708_v44 = vpop.f32.mrf.mxu3 }
  0xe1   : > { %v571_v45 = vadd.f32 %v537_v43, %v449_v40  ;;  %v2234_v46 = vadd.f32 %v781_v39, %v708_v44  ;;  %v450_v49 = vpop.f32.mrf.mxu1  ;;  %v783_v53 = vpop.f32.mrf.mxu0 }
  0xe2   : > { %v451_v58 = vadd.f32 %v450_v49, %v2158_v50 }
  0xe3   : > { %v607_v62 = vrot.slane %v571_v45, 7 }
  0xe5   : > { %v2238_v63 = vsel %vm599_vm1, %v605_v41, %v607_v62 }
  0xe8   : > { %v539_v0 = vpop.f32.mrf.mxu2  ;;  %v710_v1 = vpop.f32.mrf.mxu3 }
  0xe9   : > { %v572_v2 = vadd.f32 %v539_v0, %v451_v58  ;;  %v2240_v28 = vadd.f32 %v783_v53, %v710_v1  ;;  %v453_v5 = vpop.f32.mrf.mxu1  ;;  %v786_v10 = vpop.f32.mrf.mxu0 }
  0xea   : > { %v454_v11 = vadd.f32 %v453_v5, %v2164_v54 }
  0xeb   : > { %v609_v12 = vrot.slane %v572_v2, 7 }
  0xec   : > { %1684 = vmatmul.msk.bf16.gmra.mxu1 %vm323_vm0, %v1970_v8  ;;  %1780 = vmatmul.msk.bf16.gmra.mxu0 %vm323_vm0, %v1970_v8 }
  0xed   : > { %1724 = vmatmul.msk.bf16.gmra.mxu2 %vm323_vm0, %v2041_v29  ;;  %1748 = vmatmul.msk.bf16.gmra.mxu3 %vm323_vm0, %v1967_v7  ;;  %v2252_v50 = vsel %vm599_vm1, %v607_v62, %v609_v12 }
  0xf0   : > { %v542_v13 = vpop.f32.mrf.mxu2  ;;  %v713_v14 = vpop.f32.mrf.mxu3 }
  0xf1   : > { %v573_v16 = vadd.f32 %v542_v13, %v454_v11  ;;  %v2254_v54 = vadd.f32 %v786_v10, %v713_v14  ;;  %v455_v17 = vpop.f32.mrf.mxu1  ;;  %v788_v18 = vpop.f32.mrf.mxu0 }
  0xf2   : > { %v456_v20 = vadd.f32 %v455_v17, %v2181_v59 }
  0xf3   : > { %v611_v22 = vrot.slane %v573_v16, 7 }
  0xf5   : > { %v2258_v23 = vsel %vm599_vm1, %v609_v12, %v611_v22 }
  0xf8   : > { %v544_v24 = vpop.f32.mrf.mxu2  ;;  %v715_v26 = vpop.f32.mrf.mxu3 }
  0xf9   : > { %v574_v27 = vadd.f32 %v544_v24, %v456_v20  ;;  %v2260_v7 = vadd.f32 %v788_v18, %v715_v26  ;;  %v458_v32 = vpop.f32.mrf.mxu1  ;;  %v791_v33 = vpop.f32.mrf.mxu0 }
  0xfa   : > { %v459_v36 = vadd.f32 %v458_v32, %v2154_v47 }
  0xfb   : > { %v613_v35 = vrot.slane %v574_v27, 7 }
  0xfc   : > { %1685 = vmatmul.msk.bf16.gmra.mxu1 %vm323_vm0, %v2044_v30  ;;  %1781 = vmatmul.msk.bf16.gmra.mxu0 %vm323_vm0, %v2044_v30 }
  0xfd   : > { %1725 = vmatmul.msk.bf16.gmra.mxu2 %vm323_vm0, %v1970_v8  ;;  %1749 = vmatmul.msk.bf16.gmra.mxu3 %vm323_vm0, %v2041_v29  ;;  %v2271_v59 = vsel %vm599_vm1, %v611_v22, %v613_v35 }
 0x100   : > { %v547_v6 = vpop.f32.mrf.mxu2  ;;  %v718_v38 = vpop.f32.mrf.mxu3 }
 0x101   : > { %v575_v39 = vadd.f32 %v547_v6, %v459_v36  ;;  %v2274_v40 = vadd.f32 %v791_v33, %v718_v38  ;;  %v460_v41 = vpop.f32.mrf.mxu1  ;;  %v793_v43 = vpop.f32.mrf.mxu0 }
 0x102   : > { %v461_v49 = vadd.f32 %v460_v41, %v2160_v51 }
 0x103   : > { %v615_v44 = vrot.slane %v575_v39, 7 }
 0x105   : > { %v2277_v45 = vsel %vm599_vm1, %v613_v35, %v615_v44 }
 0x108   : > { %v549_v53 = vpop.f32.mrf.mxu2  ;;  %v720_v29 = vpop.f32.mrf.mxu3 }
 0x109   : > { %v576_v58 = vadd.f32 %v549_v53, %v461_v49  ;;  %v2280_v62 = vadd.f32 %v793_v43, %v720_v29  ;;  %v463_v0 = vpop.f32.mrf.mxu1  ;;  %v796_v47 = vpop.f32.mrf.mxu0 }
 0x10a   : > { %v464_v2 = vadd.f32 %v463_v0, %v2177_v56 }
 0x10b   : > { %v617_v1 = vrot.slane %v576_v58, 7 }
 0x10c   : > { %1686 = vmatmul.msk.bf16.gmra.mxu1 %vm323_vm0, %v1973_v9  ;;  %1782 = vmatmul.msk.bf16.gmra.mxu0 %vm323_vm0, %v1973_v9 }
 0x10d   : > { %1726 = vmatmul.msk.bf16.gmra.mxu2 %vm323_vm0, %v2044_v30  ;;  %1750 = vmatmul.msk.bf16.gmra.mxu3 %vm323_vm0, %v1970_v8  ;;  %v2291_v51 = vsel %vm599_vm1, %v615_v44, %v617_v1 }
 0x110   : > { %v552_v5 = vpop.f32.mrf.mxu2  ;;  %v723_v10 = vpop.f32.mrf.mxu3 }
 0x111   : > { %v577_v11 = vadd.f32 %v552_v5, %v464_v2  ;;  %v2294_v12 = vadd.f32 %v796_v47, %v723_v10  ;;  %v465_v13 = vpop.f32.mrf.mxu1  ;;  %v798_v14 = vpop.f32.mrf.mxu0 }
 0x112   : > { %v466_v18 = vadd.f32 %v465_v13, %v2183_v60 }
 0x113   : > { %v619_v16 = vrot.slane %v577_v11, 7 }
 0x115   : > { %v2297_v17 = vsel %vm599_vm1, %v617_v1, %v619_v16 }
 0x118   : > { %v554_v20 = vpop.f32.mrf.mxu2  ;;  %v725_v8 = vpop.f32.mrf.mxu3 }
 0x119   : > { %v578_v22 = vadd.f32 %v554_v20, %v466_v18  ;;  %v2300_v24 = vadd.f32 %v798_v14, %v725_v8  ;;  %v468_v26 = vpop.f32.mrf.mxu1  ;;  %v801_v56 = vpop.f32.mrf.mxu0 }
 0x11a   : > { %v469_v32 = vadd.f32 %v468_v26, %v2156_v48  ;;  %v647_v26 = vsel %vm599_vm1, 0.0, %v600_v19 }
 0x11b   : > { %v621_v27 = vrot.slane %v578_v22, 7 }
 0x11c   : > { %1687 = vmatmul.msk.bf16.gmra.mxu1 %vm323_vm0, %v2047_v31  ;;  %1783 = vmatmul.msk.bf16.gmra.mxu0 %vm323_vm0, %v2047_v31 }
 0x11d   : > { %1727 = vmatmul.msk.bf16.gmra.mxu2 %vm323_vm0, %v1973_v9  ;;  %1751 = vmatmul.msk.bf16.gmra.mxu3 %vm323_vm0, %v2044_v30  ;;  %v2311_v60 = vsel %vm599_vm1, %v619_v16, %v621_v27  ;;  %v1896_v16 = vmov 0  }
 0x11e   : > { %1347 = vst.msk [vmem:[%s2345_s30] sm:$0xf] %vm1346_vm2, %v1896_v16 }
 0x11f   : > { %1348 = vst.msk [vmem:[%s2345_s30 + $0x4] sm:$0xf] %vm1346_vm2, %v1896_v16 }
 0x120   : > { %v557_v33 = vpop.f32.mrf.mxu2  ;;  %v728_v35 = vpop.f32.mrf.mxu3  ;;  %1365 = vst.msk [vmem:[%s2345_s30 + $0x48] sm:$0xf] %vm1346_vm2, %v1896_v16 }
 0x121   : > { %v579_v36 = vadd.f32 %v557_v33, %v469_v32  ;;  %v2314_v6 = vadd.f32 %v801_v56, %v728_v35  ;;  %v470_v38 = vpop.f32.mrf.mxu1  ;;  %v803_v39 = vpop.f32.mrf.mxu0  ;;  %1366 = vst.msk [vmem:[%s2345_s30 + $0x4c] sm:$0xf] %vm1346_vm2, %v1896_v16 }
 0x122   : > { %v471_v44 = vadd.f32 %v470_v38, %v2162_v52 }
 0x123   : > { %v623_v41 = vrot.slane %v579_v36, 7 }
 0x125   : > { %v2317_v43 = vsel %vm599_vm1, %v621_v27, %v623_v41 }
 0x128   : > { %v559_v49 = vpop.f32.mrf.mxu2  ;;  %v730_v30 = vpop.f32.mrf.mxu3 }
 0x129   : > { %v580_v53 = vadd.f32 %v559_v49, %v471_v44  ;;  %v2320_v29 = vadd.f32 %v803_v39, %v730_v30  ;;  %v473_v58 = vpop.f32.mrf.mxu1  ;;  %v806_v48 = vpop.f32.mrf.mxu0 }
 0x12a   : > { %v474_v47 = vadd.f32 %v473_v58, %v2179_v57 }
 0x12b   : > { %v625_v0 = vrot.slane %v580_v53, 7 }
 0x12c   : > { %1688 = vmatmul.msk.bf16.gmra.mxu1 %vm323_vm0, %v2167_v55  ;;  %1784 = vmatmul.msk.bf16.gmra.mxu0 %vm323_vm0, %v2167_v55 }
 0x12d   : > { %1728 = vmatmul.msk.bf16.gmra.mxu2 %vm323_vm0, %v2047_v31  ;;  %1752 = vmatmul.msk.bf16.gmra.mxu3 %vm323_vm0, %v1973_v9  ;;  %v2331_v52 = vsel %vm599_vm1, %v623_v41, %v625_v0 }
 0x130   : > { %v562_v1 = vpop.f32.mrf.mxu2  ;;  %v733_v2 = vpop.f32.mrf.mxu3 }
 0x131   : > { %v581_v5 = vadd.f32 %v562_v1, %v474_v47  ;;  %v2334_v10 = vadd.f32 %v806_v48, %v733_v2  ;;  %v475_v11 = vpop.f32.mrf.mxu1  ;;  %v808_v13 = vpop.f32.mrf.mxu0 }
 0x132   : > { %v476_v31 = vadd.f32 %v475_v11, %v2185_v61 }
 0x133   : > { %v627_v14 = vrot.slane %v581_v5, 7 }
 0x135   : > { %v2337_v55 = vsel %vm599_vm1, %v625_v0, %v627_v14  ;;  %v1265_v0 = vlaneseq }
 0x137   : > { %v2374_v5 = vshrl.u32 %v1265_v0, 7 }
 0x138   : > { %v564_v9 = vpop.f32.mrf.mxu2  ;;  %v735_v57 = vpop.f32.mrf.mxu3 }
 0x139   : > { %v582_v18 = vadd.f32 %v564_v9, %v476_v31  ;;  %v2349_v20 = vadd.f32 %v808_v13, %v735_v57  ;;  %v852_v61 = vpop.f32.mrf.mxu1  ;;  %v1128_v8 = vpop.f32.mrf.mxu0  ;;  %vm1268_vm4 = vcmp.ge.s32.totalorder %v2374_v5, 1 }
 0x13a   : > { %v892_v22 = vadd.f32 %v852_v61, %v2197_v4 }
 0x13b   : > { %v629_v56 = vrot.slane %v582_v18, 7 }
 0x13c   : > { %v908_v27 = vadd.f32 %v892_v22, %v647_v26 }
 0x13d   : > { %v2362_v32 = vsel %vm599_vm1, %v627_v14, %v629_v56 }
 0x140   : > { %v974_v33 = vpop.f32.mrf.mxu2  ;;  %v1047_v35 = vpop.f32.mrf.mxu3 }
 0x141   : > { %v854_v36 = vpop.f32.mrf.mxu1  ;;  %v1130_v38 = vpop.f32.mrf.mxu0  ;;  %v1048_v41 = vadd.f32 %v1047_v35, %v974_v33 }
 0x142   : > { %v893_v39 = vadd.f32 %v854_v36, %v2199_v15  ;;  %v2371_v15 = vld [vmem:[%s2513_s2] ss:$0 sm:$0xff] }
 0x143   : > { %v1168_v49 = vadd.f32 %v1128_v8, %v1048_v41 }
 0x144   : > { %v909_v4 = vadd.f32 %v893_v39, %v2213_v21 }
 0x145   : > { %v1201_v1 = vrot.slane %v1168_v49, 1 }
 0x148   : > { %v976_v44 = vpop.f32.mrf.mxu2  ;;  %v1049_v3 = vpop.f32.mrf.mxu3 }
 0x149   : > { %v1050_v19 = vadd.f32 %v1049_v3, %v976_v44  ;;  %v857_v30 = vpop.f32.mrf.mxu1  ;;  %v1133_v53 = vpop.f32.mrf.mxu0 }
 0x14a   : > { %v894_v58 = vadd.f32 %v857_v30, %v2215_v25 }
 0x14b   : > { %v1169_v48 = vadd.f32 %v1130_v38, %v1050_v19 }
 0x14c   : > { %v910_v47 = vadd.f32 %v894_v58, %v2218_v34 }
 0x14d   : > { %v1202_v2 = vrot.slane %v1169_v48, 1 }
 0x14f   : > { %v1203_v21 = vsel %vm1200_vm3, %v1201_v1, %v1202_v2 }
 0x150   : > { %v1249_v11 = vadd.f32 %v1203_v21, %v908_v27  ;;  %v979_v13 = vpop.f32.mrf.mxu2  ;;  %v1052_v14 = vpop.f32.mrf.mxu3  ;;  %v2384_v27 = vadd.s32 8, %v2374_v5 }
 0x151   : > { %v1053_v25 = vadd.f32 %v1052_v14, %v979_v13  ;;  %v859_v31 = vpop.f32.mrf.mxu1  ;;  %v1135_v9 = vpop.f32.mrf.mxu0 }
 0x152   : > { %v1278_v34 = vadd.f32 %v2371_v15, %v1249_v11  ;;  %v895_v57 = vadd.f32 %v859_v31, %v2220_v37  ;;  %vm1271_vm5 = vcmp.le.s32.totalorder %v2384_v27, 8 }
 0x153   : > { %v1170_v16 = vadd.f32 %v1133_v53, %v1053_v25 }
 0x154   : > { %v1294_v18 = vmax.f32 %v1278_v34, 0.0  ;;  %v911_v61 = vadd.f32 %v895_v57, %v2232_v42 }
 0x155   : > { %v1204_v8 = vrot.slane %v1170_v16, 1 }
 0x156   : > { %v1314_v22 = vsel %vm1268_vm4, %v1294_v18, 0.0 }
 0x157   : > { %v1330_v26 = vpack.c.bf16 %v1314_v22, %v1314_v22  ;;  %v1205_v56 = vsel %vm1200_vm3, %v1202_v2, %v1204_v8 }
 0x158   : > { %v1250_v33 = vadd.f32 %v1205_v56, %v909_v4  ;;  %v981_v35 = vpop.f32.mrf.mxu2  ;;  %v1054_v36 = vpop.f32.mrf.mxu3 }
 0x159   : > { %1349 = vst.msk [vmem:[%s2345_s30 + $0x8] sm:$0xf] %vm1346_vm2, %v1330_v26  ;;  %v1055_v37 = vadd.f32 %v1054_v36, %v981_v35  ;;  %v862_v38 = vpop.f32.mrf.mxu1  ;;  %v1138_v39 = vpop.f32.mrf.mxu0 }
 0x15a   : > { %v1279_v42 = vadd.f32 %v2371_v15, %v1250_v33  ;;  %v896_v41 = vadd.f32 %v862_v38, %v2234_v46 }
 0x15b   : > { %v1171_v44 = vadd.f32 %v1135_v9, %v1055_v37 }
 0x15c   : > { %v1295_v3 = vmax.f32 %v1279_v42, 0.0  ;;  %v912_v49 = vadd.f32 %v896_v41, %v2238_v63 }
 0x15d   : > { %v1206_v19 = vrot.slane %v1171_v44, 1 }
 0x15e   : > { %v1315_v4 = vsel %vm1271_vm5, %v1295_v3, 0.0 }
 0x15f   : > { %v1331_v30 = vpack.c.bf16 %v1315_v4, %v1315_v4  ;;  %v1207_v53 = vsel %vm1200_vm3, %v1204_v8, %v1206_v19 }
 0x160   : > { %v1251_v58 = vadd.f32 %v1207_v53, %v910_v47  ;;  %v984_v48 = vpop.f32.mrf.mxu2  ;;  %v1057_v0 = vpop.f32.mrf.mxu3 }
 0x161   : > { %1350 = vst.msk [vmem:[%s2345_s30 + $0xc] sm:$0xf] %vm1346_vm2, %v1331_v30  ;;  %v1058_v46 = vadd.f32 %v1057_v0, %v984_v48  ;;  %v864_v1 = vpop.f32.mrf.mxu1  ;;  %v1140_v2 = vpop.f32.mrf.mxu0 }
 0x162   : > { %v1280_v21 = vadd.f32 %v2371_v15, %v1251_v58  ;;  %v897_v63 = vadd.f32 %v864_v1, %v2240_v28 }
 0x163   : > { %v1172_v11 = vadd.f32 %v1138_v39, %v1058_v46 }
 0x164   : > { %v1296_v13 = vmax.f32 %v1280_v21, 0.0  ;;  %v913_v14 = vadd.f32 %v897_v63, %v2252_v50 }
 0x165   : > { %v1208_v25 = vrot.slane %v1172_v11, 1 }
 0x166   : > { %v1316_v47 = vsel %vm1268_vm4, %v1296_v13, 0.0 }
 0x167   : > { %v1332_v31 = vpack.c.bf16 %v1316_v47, %v1316_v47  ;;  %v1209_v9 = vsel %vm1200_vm3, %v1206_v19, %v1208_v25 }
 0x168   : > { %v1252_v34 = vadd.f32 %v1209_v9, %v911_v61  ;;  %v986_v57 = vpop.f32.mrf.mxu2  ;;  %v1059_v16 = vpop.f32.mrf.mxu3 }
 0x169   : > { %1351 = vst.msk [vmem:[%s2345_s30 + $0x10] sm:$0xf] %vm1346_vm2, %v1332_v31  ;;  %v1060_v18 = vadd.f32 %v1059_v16, %v986_v57  ;;  %v867_v8 = vpop.f32.mrf.mxu1  ;;  %v1143_v28 = vpop.f32.mrf.mxu0 }
 0x16a   : > { %v1281_v22 = vadd.f32 %v2371_v15, %v1252_v34  ;;  %v898_v50 = vadd.f32 %v867_v8, %v2254_v54 }
 0x16b   : > { %v1173_v26 = vadd.f32 %v1140_v2, %v1060_v18 }
 0x16c   : > { %v1297_v56 = vmax.f32 %v1281_v22, 0.0  ;;  %v914_v33 = vadd.f32 %v898_v50, %v2258_v23 }
 0x16d   : > { %v1210_v35 = vrot.slane %v1173_v26, 1 }
 0x16e   : > { %v1317_v61 = vsel %vm1271_vm5, %v1297_v56, 0.0 }
 0x16f   : > { %v1333_v36 = vpack.c.bf16 %v1317_v61, %v1317_v61  ;;  %v1211_v37 = vsel %vm1200_vm3, %v1208_v25, %v1210_v35 }
 0x170   : > { %v1253_v38 = vadd.f32 %v1211_v37, %v912_v49  ;;  %v989_v39 = vpop.f32.mrf.mxu2  ;;  %v1062_v42 = vpop.f32.mrf.mxu3 }
 0x171   : > { %1352 = vst.msk [vmem:[%s2345_s30 + $0x14] sm:$0xf] %vm1346_vm2, %v1333_v36  ;;  %v1063_v41 = vadd.f32 %v1062_v42, %v989_v39  ;;  %v869_v44 = vpop.f32.mrf.mxu1  ;;  %v1145_v54 = vpop.f32.mrf.mxu0 }
 0x172   : > { %v1282_v3 = vadd.f32 %v2371_v15, %v1253_v38  ;;  %v899_v23 = vadd.f32 %v869_v44, %v2260_v7 }
 0x173   : > { %v1174_v19 = vadd.f32 %v1143_v28, %v1063_v41 }
 0x174   : > { %v1298_v4 = vmax.f32 %v1282_v3, 0.0  ;;  %v915_v30 = vadd.f32 %v899_v23, %v2271_v59 }
 0x175   : > { %v1212_v53 = vrot.slane %v1174_v19, 1 }
 0x176   : > { %v1318_v49 = vsel %vm1268_vm4, %v1298_v4, 0.0 }
 0x177   : > { %v1334_v58 = vpack.c.bf16 %v1318_v49, %v1318_v49  ;;  %v1213_v48 = vsel %vm1200_vm3, %v1210_v35, %v1212_v53 }
 0x178   : > { %v1254_v0 = vadd.f32 %v1213_v48, %v913_v14  ;;  %v991_v46 = vpop.f32.mrf.mxu2  ;;  %v1064_v1 = vpop.f32.mrf.mxu3 }
 0x179   : > { %1353 = vst.msk [vmem:[%s2345_s30 + $0x18] sm:$0xf] %vm1346_vm2, %v1334_v58  ;;  %v1065_v2 = vadd.f32 %v1064_v1, %v991_v46  ;;  %v872_v21 = vpop.f32.mrf.mxu1  ;;  %v1148_v7 = vpop.f32.mrf.mxu0 }
 0x17a   : > { %v1283_v63 = vadd.f32 %v2371_v15, %v1254_v0  ;;  %v900_v59 = vadd.f32 %v872_v21, %v2274_v40 }
 0x17b   : > { %v1175_v11 = vadd.f32 %v1145_v54, %v1065_v2 }
 0x17c   : > { %v1299_v13 = vmax.f32 %v1283_v63, 0.0  ;;  %v916_v25 = vadd.f32 %v900_v59, %v2277_v45 }
 0x17d   : > { %v1214_v47 = vrot.slane %v1175_v11, 1 }
 0x17e   : > { %v1319_v14 = vsel %vm1271_vm5, %v1299_v13, 0.0 }
 0x17f   : > { %v1335_v31 = vpack.c.bf16 %v1319_v14, %v1319_v14  ;;  %v1215_v9 = vsel %vm1200_vm3, %v1212_v53, %v1214_v47 }
 0x180   : > { %v1255_v34 = vadd.f32 %v1215_v9, %v914_v33  ;;  %v994_v57 = vpop.f32.mrf.mxu2  ;;  %v1067_v16 = vpop.f32.mrf.mxu3 }
 0x181   : > { %1354 = vst.msk [vmem:[%s2345_s30 + $0x1c] sm:$0xf] %vm1346_vm2, %v1335_v31  ;;  %v1068_v18 = vadd.f32 %v1067_v16, %v994_v57  ;;  %v874_v8 = vpop.f32.mrf.mxu1  ;;  %v1150_v40 = vpop.f32.mrf.mxu0 }
 0x182   : > { %v1284_v28 = vadd.f32 %v2371_v15, %v1255_v34  ;;  %v901_v45 = vadd.f32 %v874_v8, %v2280_v62 }
 0x183   : > { %v1176_v22 = vadd.f32 %v1148_v7, %v1068_v18 }
 0x184   : > { %v1300_v50 = vmax.f32 %v1284_v28, 0.0  ;;  %v917_v26 = vadd.f32 %v901_v45, %v2291_v51 }
 0x185   : > { %v1216_v56 = vrot.slane %v1176_v22, 1 }
 0x186   : > { %v1320_v33 = vsel %vm1268_vm4, %v1300_v50, 0.0 }
 0x187   : > { %v1336_v35 = vpack.c.bf16 %v1320_v33, %v1320_v33  ;;  %v1217_v61 = vsel %vm1200_vm3, %v1214_v47, %v1216_v56 }
 0x188   : > { %v1256_v36 = vadd.f32 %v1217_v61, %v915_v30  ;;  %v996_v37 = vpop.f32.mrf.mxu2  ;;  %v1069_v38 = vpop.f32.mrf.mxu3 }
 0x189   : > { %1355 = vst.msk [vmem:[%s2345_s30 + $0x20] sm:$0xf] %vm1346_vm2, %v1336_v35  ;;  %v1070_v39 = vadd.f32 %v1069_v38, %v996_v37  ;;  %v877_v42 = vpop.f32.mrf.mxu1  ;;  %v1153_v62 = vpop.f32.mrf.mxu0 }
 0x18a   : > { %v1285_v41 = vadd.f32 %v2371_v15, %v1256_v36  ;;  %v902_v51 = vadd.f32 %v877_v42, %v2294_v12 }
 0x18b   : > { %v1177_v44 = vadd.f32 %v1150_v40, %v1070_v39 }
 0x18c   : > { %v1301_v54 = vmax.f32 %v1285_v41, 0.0  ;;  %v918_v3 = vadd.f32 %v902_v51, %v2297_v17 }
 0x18d   : > { %v1218_v23 = vrot.slane %v1177_v44, 1 }
 0x18e   : > { %v1321_v19 = vsel %vm1271_vm5, %v1301_v54, 0.0 }
 0x18f   : > { %v1337_v4 = vpack.c.bf16 %v1321_v19, %v1321_v19  ;;  %v1219_v30 = vsel %vm1200_vm3, %v1216_v56, %v1218_v23 }
 0x190   : > { %v1257_v53 = vadd.f32 %v1219_v30, %v916_v25  ;;  %v999_v49 = vpop.f32.mrf.mxu2  ;;  %v1072_v58 = vpop.f32.mrf.mxu3 }
 0x191   : > { %1356 = vst.msk [vmem:[%s2345_s30 + $0x24] sm:$0xf] %vm1346_vm2, %v1337_v4  ;;  %v1073_v48 = vadd.f32 %v1072_v58, %v999_v49  ;;  %v879_v0 = vpop.f32.mrf.mxu1  ;;  %v1155_v12 = vpop.f32.mrf.mxu0 }
 0x192   : > { %v1286_v46 = vadd.f32 %v2371_v15, %v1257_v53  ;;  %v903_v17 = vadd.f32 %v879_v0, %v2300_v24 }
 0x193   : > { %v1178_v1 = vadd.f32 %v1153_v62, %v1073_v48 }
 0x194   : > { %v1302_v2 = vmax.f32 %v1286_v46, 0.0  ;;  %v919_v21 = vadd.f32 %v903_v17, %v2311_v60 }
 0x195   : > { %v1220_v7 = vrot.slane %v1178_v1, 1 }
 0x196   : > { %v1322_v63 = vsel %vm1268_vm4, %v1302_v2, 0.0 }
 0x197   : > { %v1338_v59 = vpack.c.bf16 %v1322_v63, %v1322_v63  ;;  %v1221_v11 = vsel %vm1200_vm3, %v1218_v23, %v1220_v7 }
 0x198   : > { %v1258_v13 = vadd.f32 %v1221_v11, %v917_v26  ;;  %v1001_v25 = vpop.f32.mrf.mxu2  ;;  %v1074_v47 = vpop.f32.mrf.mxu3 }
 0x199   : > { %1357 = vst.msk [vmem:[%s2345_s30 + $0x28] sm:$0xf] %vm1346_vm2, %v1338_v59  ;;  %v1075_v14 = vadd.f32 %v1074_v47, %v1001_v25  ;;  %v882_v31 = vpop.f32.mrf.mxu1  ;;  %v1158_v34 = vpop.f32.mrf.mxu0 }
 0x19a   : > { %v1287_v24 = vadd.f32 %v2371_v15, %v1258_v13  ;;  %v904_v9 = vadd.f32 %v882_v31, %v2314_v6 }
 0x19b   : > { %v1179_v60 = vadd.f32 %v1155_v12, %v1075_v14 }
 0x19c   : > { %v1303_v57 = vmax.f32 %v1287_v24, 0.0  ;;  %v920_v16 = vadd.f32 %v904_v9, %v2317_v43 }
 0x19d   : > { %v1222_v18 = vrot.slane %v1179_v60, 1 }
 0x19e   : > { %v1323_v8 = vsel %vm1271_vm5, %v1303_v57, 0.0 }
 0x19f   : > { %v1339_v40 = vpack.c.bf16 %v1323_v8, %v1323_v8  ;;  %v1223_v28 = vsel %vm1200_vm3, %v1220_v7, %v1222_v18 }
 0x1a0   : > { %v1259_v45 = vadd.f32 %v1223_v28, %v918_v3  ;;  %v1004_v22 = vpop.f32.mrf.mxu2  ;;  %v1077_v50 = vpop.f32.mrf.mxu3 }
 0x1a1   : > { %1358 = vst.msk [vmem:[%s2345_s30 + $0x2c] sm:$0xf] %vm1346_vm2, %v1339_v40  ;;  %v1078_v26 = vadd.f32 %v1077_v50, %v1004_v22  ;;  %v884_v6 = vpop.f32.mrf.mxu1  ;;  %v1160_v37 = vpop.f32.mrf.mxu0 }
 0x1a2   : > { %v1288_v56 = vadd.f32 %v2371_v15, %v1259_v45  ;;  %v905_v33 = vadd.f32 %v884_v6, %v2320_v29 }
 0x1a3   : > { %v1180_v43 = vadd.f32 %v1158_v34, %v1078_v26 }
 0x1a4   : > { %v1304_v35 = vmax.f32 %v1288_v56, 0.0  ;;  %v921_v61 = vadd.f32 %v905_v33, %v2331_v52 }
 0x1a5   : > { %v1224_v36 = vrot.slane %v1180_v43, 1 }
 0x1a6   : > { %v1324_v38 = vsel %vm1268_vm4, %v1304_v35, 0.0 }
 0x1a7   : > { %v1340_v39 = vpack.c.bf16 %v1324_v38, %v1324_v38  ;;  %v1225_v42 = vsel %vm1200_vm3, %v1222_v18, %v1224_v36 }
 0x1a8   : > { %v1260_v62 = vadd.f32 %v1225_v42, %v919_v21  ;;  %v1006_v41 = vpop.f32.mrf.mxu2  ;;  %v1079_v51 = vpop.f32.mrf.mxu3 }
 0x1a9   : > { %1359 = vst.msk [vmem:[%s2345_s30 + $0x30] sm:$0xf] %vm1346_vm2, %v1340_v39  ;;  %v1080_v44 = vadd.f32 %v1079_v51, %v1006_v41  ;;  %v887_v29 = vpop.f32.mrf.mxu1  ;;  %v1163_v58 = vpop.f32.mrf.mxu0 }
 0x1aa   : > { %v1289_v54 = vadd.f32 %v2371_v15, %v1260_v62  ;;  %v906_v52 = vadd.f32 %v887_v29, %v2334_v10 }
 0x1ab   : > { %v1181_v3 = vadd.f32 %v1160_v37, %v1080_v44 }
 0x1ac   : > { %v1305_v23 = vmax.f32 %v1289_v54, 0.0  ;;  %v922_v19 = vadd.f32 %v906_v52, %v2337_v55 }
 0x1ad   : > { %v1226_v4 = vrot.slane %v1181_v3, 1 }
 0x1ae   : > { %v1325_v30 = vsel %vm1271_vm5, %v1305_v23, 0.0 }
 0x1af   : > { %v1341_v53 = vpack.c.bf16 %v1325_v30, %v1325_v30  ;;  %v1227_v49 = vsel %vm1200_vm3, %v1224_v36, %v1226_v4 }
 0x1b0   : > { %v1261_v48 = vadd.f32 %v1227_v49, %v920_v16  ;;  %v1009_v0 = vpop.f32.mrf.mxu2  ;;  %v1082_v12 = vpop.f32.mrf.mxu3 }
 0x1b1   : > { %1360 = vst.msk [vmem:[%s2345_s30 + $0x34] sm:$0xf] %vm1346_vm2, %v1341_v53  ;;  %v1083_v46 = vadd.f32 %v1082_v12, %v1009_v0  ;;  %v889_v10 = vpop.f32.mrf.mxu1  ;;  %v1165_v31 = vpop.f32.mrf.mxu0 }
 0x1b2   : > { %v1290_v17 = vadd.f32 %v2371_v15, %v1261_v48  ;;  %v907_v55 = vadd.f32 %v889_v10, %v2349_v20 }
 0x1b3   : > { %v1182_v1 = vadd.f32 %v1163_v58, %v1083_v46 }
 0x1b4   : > { %v1306_v2 = vmax.f32 %v1290_v17, 0.0  ;;  %v923_v21 = vadd.f32 %v907_v55, %v2362_v32 }
 0x1b5   : > { %v1228_v7 = vrot.slane %v1182_v1, 1 }
 0x1b6   : > { %v1326_v63 = vsel %vm1268_vm4, %v1306_v2, 0.0 }
 0x1b7   : > { %v1342_v59 = vpack.c.bf16 %v1326_v63, %v1326_v63  ;;  %v1229_v11 = vsel %vm1200_vm3, %v1226_v4, %v1228_v7 }
 0x1b8   : > { %v1262_v13 = vadd.f32 %v1229_v11, %v921_v61  ;;  %v1011_v25 = vpop.f32.mrf.mxu2  ;;  %v1084_v47 = vpop.f32.mrf.mxu3 }
 0x1b9   : > { %1361 = vst.msk [vmem:[%s2345_s30 + $0x38] sm:$0xf] %vm1346_vm2, %v1342_v59  ;;  %v1085_v14 = vadd.f32 %v1084_v47, %v1011_v25 }
 0x1ba   : > { %v1291_v20 = vadd.f32 %v2371_v15, %v1262_v13 }
 0x1bb   : > { %v1183_v24 = vadd.f32 %v1165_v31, %v1085_v14 }
 0x1bc   : > { %v1307_v9 = vmax.f32 %v1291_v20, 0.0 }
 0x1bd   : > { %v1230_v32 = vrot.slane %v1183_v24, 1 }
 0x1be   : > { %v1327_v60 = vsel %vm1271_vm5, %v1307_v9, 0.0 }
 0x1bf   : > { %v1343_v34 = vpack.c.bf16 %v1327_v60, %v1327_v60  ;;  %v1231_v57 = vsel %vm1200_vm3, %v1228_v7, %v1230_v32  ;;  %v1248_v16 = vsel %vm1200_vm3, %v1230_v32, 0.0 }
 0x1c0   : > { %v1263_v18 = vadd.f32 %v1231_v57, %v922_v19  ;;  %v1264_v8 = vadd.f32 %v1248_v16, %v923_v21 }
 0x1c1   : > { %1362 = vst.msk [vmem:[%s2345_s30 + $0x3c] sm:$0xf] %vm1346_vm2, %v1343_v34 }
 0x1c2   : > { %v1292_v40 = vadd.f32 %v2371_v15, %v1263_v18  ;;  %v1293_v28 = vadd.f32 %v2371_v15, %v1264_v8 }
 0x1c4   : > { %v1308_v45 = vmax.f32 %v1292_v40, 0.0  ;;  %v1309_v22 = vmax.f32 %v1293_v28, 0.0 }
 0x1c6   : > { %v1328_v50 = vsel %vm1268_vm4, %v1308_v45, 0.0  ;;  %v1329_v26 = vsel %vm1271_vm5, %v1309_v22, 0.0 }
 0x1c7   : > { %v1344_v6 = vpack.c.bf16 %v1328_v50, %v1328_v50  ;;  %v1345_v56 = vpack.c.bf16 %v1329_v26, %v1329_v26 }
 0x1c9   : > { %1363 = vst.msk [vmem:[%s2345_s30 + $0x40] sm:$0xf] %vm1346_vm2, %v1344_v6 }
 0x1ca   : > { %1364 = vst.msk [vmem:[%s2345_s30 + $0x44] sm:$0xf] %vm1346_vm2, %v1345_v56 }
 0x1cb PF: > { %s13_s14 = sadd.s32 1, %s1894_s14   ;;  %s2515_s12 = smov %s1890_s13 }
 0x1cc   : > { %p10_p5 = scmp.ge.s32.totalorder %s13_s14, 4   ;;  %s2516_s13 = smov %s2518_s15 }
 0x1ce   :  { %12 = sbr.rel (!%p10_p5) target bundleno = 2 (0x2), region = 70 }

</bundles_post_ra>
